<compile_context>
chip_gen: v5e
topology: v5e:2x2
jax: 0.10.0
libtpu: 0.0.40
codegen_flags: <defaults>
</compile_context>

<pallas_src>
from functools import partial

import jax
import jax.numpy as jnp
from jax import lax
from jax.experimental import pallas as pl
from jax.experimental.pallas import tpu as pltpu


def _mha_kernel(x_ref, wqkv_ref, wproj_ref, bproj_ref, o_ref, *,
                num_heads, head_size, mxu_dtype, approx_recip):
    # x_ref:     (bb, T, C)  batch tile
    # wqkv_ref:  (C, 3*C)    fused [Q_all(scaled) | K_all | V_all], mxu dtype
    # wproj_ref: (C, C)      output projection (transposed nn.Linear weight)
    # bproj_ref: (1, C)      output projection bias, f32
    # o_ref:     (bb, T, C)  output tile
    bb, T, C = x_ref.shape

    # --- fused QKV projection: one MXU pass with M = bb*T ---------------------
    # Merging leading dims is layout-free because T is a sublane multiple.
    x2 = x_ref[...].reshape(bb * T, C).astype(mxu_dtype)
    qkv = jnp.dot(x2, wqkv_ref[...], preferred_element_type=jnp.float32)
    qkv = qkv.astype(mxu_dtype).reshape(bb, T, 3 * C)
    q_all = qkv[:, :, 0 * C:1 * C]   # already scaled by 1/sqrt(embedding_size)
    k_all = qkv[:, :, 1 * C:2 * C]
    v_all = qkv[:, :, 2 * C:3 * C]

    # --- causal mask from (T, T) 2-D iotas, built once, broadcast over batch --
    row = lax.broadcasted_iota(jnp.int32, (T, T), 0)
    col = lax.broadcasted_iota(jnp.int32, (T, T), 1)
    causal = (col <= row)[None, :, :]                          # (1, T, T) bool

    wp = wproj_ref[...]                                        # (C, C) mxu dtype
    y = jnp.zeros((bb * T, C), jnp.float32)

    # num_heads is small & static -> plain Python loop (fully unrolled).
    for h in range(num_heads):
        sl = slice(h * head_size, (h + 1) * head_size)
        q, k, v = q_all[..., sl], k_all[..., sl], v_all[..., sl]

        # scores: contract the shared last dim (no explicit k transpose / XLU).
        s = jnp.einsum('bqd,bkd->bqk', q, k,
                       preferred_element_type=jnp.float32)     # (bb, T, T) f32
        s = jnp.where(causal, s, -jnp.inf)

        # softmax in f32; normalization deferred past the PV matmul.
        m = jnp.max(s, axis=-1, keepdims=True)
        e = jnp.exp(s - m)
        denom = jnp.sum(e, axis=-1, keepdims=True)

        # Attention-weight dropout is identity in eval mode.

        o_h = jnp.einsum('bqk,bkd->bqd', e.astype(mxu_dtype), v,
                         preferred_element_type=jnp.float32)   # (bb, T, Hs) f32
        inv = pl.reciprocal(denom, approx=True) if approx_recip else 1.0 / denom
        o_h = (o_h * inv).reshape(bb * T, head_size)

        # Fold this head's slice of the output projection in directly
        # (equivalent to concat(heads) @ w_proj, without the lane-dim concat).
        y = y + jnp.dot(o_h.astype(mxu_dtype), wp[sl, :],
                        preferred_element_type=jnp.float32)

    y = y + bproj_ref[...].astype(jnp.float32)                 # proj bias
    # Projection dropout is identity in eval mode.
    o_ref[...] = y.reshape(bb, T, C).astype(o_ref.dtype)


def _pick_bb(B, T, C, itemsize):
    """Batch-tile size: >= 2 grid steps when B >= 2 (v7x has 2 TensorCores and
    the batch axis is marked "parallel"), then the largest divisor of B whose
    per-step VMEM footprint fits a conservative budget (safe on v7x's 64 MiB)."""
    budget = 24 << 20

    def fits(bb):
        x_io = 4 * bb * T * C * itemsize     # double-buffered input + output blocks
        interm = bb * T * (3 * C + C) * 4    # qkv + projection accumulator (f32)
        probs = 2 * bb * T * T * 4           # scores + exp, f32, one head live
        return x_io + interm + probs <= budget

    max_bb = B if B < 2 else B // 2
    for bb in range(max_bb, 0, -1):
        if B % bb == 0 and fits(bb):
            return bb
    return 1


def prepare_multihead_params(w_q_heads, w_k_heads, w_v_heads, w_proj, b_proj,
                             *, embedding_size, mxu_dtype=jnp.bfloat16):
    """Hoisted (per-weight-set, not per-call) construction of the fused weights.

    w_*_heads: lists of per-head (C, head_size) matrices (already transposed vs
    nn.Linear.weight). w_proj: (C, C) transposed proj weight. b_proj: (C,).
    The 1/sqrt(embedding_size) score scale is folded into the query weights.
    """
    inv_scale = 1.0 / (embedding_size ** 0.5)
    w_q = jnp.concatenate(w_q_heads, axis=1) * inv_scale       # (C, C)
    w_k = jnp.concatenate(w_k_heads, axis=1)                   # (C, C)
    w_v = jnp.concatenate(w_v_heads, axis=1)                   # (C, C)
    w_qkv = jnp.concatenate([w_q, w_k, w_v], axis=1).astype(mxu_dtype)  # (C, 3C)
    return (w_qkv,
            w_proj.astype(mxu_dtype),
            b_proj.reshape(1, -1).astype(jnp.float32))


def multihead_forward(x, w_qkv, w_proj, b_proj, *, num_heads, approx_recip=True):
    """x: (B, T, C); fused params from prepare_multihead_params. Returns (B, T, C)."""
    B, T, C = x.shape
    if T % 8 != 0:
        raise ValueError("T must be a multiple of 8 (pad the sequence).")
    head_size = C // num_heads
    mxu_dtype = w_qkv.dtype

    bb = _pick_bb(B, T, C, jnp.dtype(x.dtype).itemsize)
    grid = (B // bb,)

    kernel = partial(_mha_kernel, num_heads=num_heads, head_size=head_size,
                     mxu_dtype=mxu_dtype, approx_recip=approx_recip)

    return pl.pallas_call(
        kernel,
        out_shape=jax.ShapeDtypeStruct((B, T, C), x.dtype),
        grid_spec=pltpu.PrefetchScalarGridSpec(
            num_scalar_prefetch=0,
            grid=grid,
            in_specs=[
                pl.BlockSpec((bb, T, C), lambda b: (b, 0, 0)),
                # Weight blocks are constant across the grid (index_map (0, 0));
                # tiny here, so default double-buffering cost is negligible.
                pl.BlockSpec((C, 3 * C), lambda b: (0, 0)),
                pl.BlockSpec((C, C), lambda b: (0, 0)),
                pl.BlockSpec((1, C), lambda b: (0, 0)),
            ],
            out_specs=pl.BlockSpec((bb, T, C), lambda b: (b, 0, 0)),
        ),
        compiler_params=pltpu.CompilerParams(
            # Batch axis is independent -> multi-TC parts (v7x) can split it.
            dimension_semantics=("parallel",),
            # Explicit scoped-VMEM budget; 32 MiB fits every generation
            # (v7x: 64 MiB physical), matching the _pick_bb budget + headroom.
            vmem_limit_bytes=32 * 1024 * 1024,
        ),
    )(x, w_qkv, w_proj, b_proj)


def multihead_reference(x, w_q_heads, w_k_heads, w_v_heads, w_proj, b_proj,
                        *, embedding_size):
    """Plain-JAX reference mirroring the PyTorch MultiHead forward (eval mode)."""
    T = x.shape[1]
    mask = jnp.tril(jnp.ones((T, T), dtype=bool))
    outs = []
    for wq, wk, wv in zip(w_q_heads, w_k_heads, w_v_heads):
        q, k, v = x @ wq, x @ wk, x @ wv
        s = (q @ jnp.swapaxes(k, -2, -1)) / (embedding_size ** 0.5)
        s = jnp.where(mask, s, -jnp.inf)
        a = jax.nn.softmax(s, axis=-1)
        outs.append(a @ v)
    h = jnp.concatenate(outs, axis=-1)
    return h @ w_proj + b_proj


if __name__ == "__main__":
    # Small shapes consistent with the module: context_len=T, embedding_size=C,
    # num_heads heads of head_size = C // num_heads.
    B, T, C, num_heads = 2, 8, 32, 2
    head_size = C // num_heads
    embedding_size = C

    key = jax.random.PRNGKey(0)
    kx, kp, kb, *khead = jax.random.split(key, 3 + 3 * num_heads)

    x = jax.random.normal(kx, (B, T, C), dtype=jnp.float32)

    # nn.Linear(C, H, bias=False).weight is (H, C); y = x @ weight.T -> store
    # the transposed (C, H) form directly. Init ~ U(-1/sqrt(C), 1/sqrt(C)).
    scale = (1.0 / C) ** 0.5
    w_q_heads, w_k_heads, w_v_heads = [], [], []
    for h in range(num_heads):
        kq, kk, kv = khead[3 * h], khead[3 * h + 1], khead[3 * h + 2]
        w_q_heads.append(jax.random.uniform(kq, (C, head_size), jnp.float32, -scale, scale))
        w_k_heads.append(jax.random.uniform(kk, (C, head_size), jnp.float32, -scale, scale))
        w_v_heads.append(jax.random.uniform(kv, (C, head_size), jnp.float32, -scale, scale))
    w_proj = jax.random.uniform(kp, (C, C), jnp.float32, -scale, scale)   # transposed
    b_proj = jax.random.uniform(kb, (C,), jnp.float32, -scale, scale)

    # Hoisted fused-weight construction (once per weight set, not per call).
    w_qkv_f, w_proj_f, b_proj_f = prepare_multihead_params(
        w_q_heads, w_k_heads, w_v_heads, w_proj, b_proj,
        embedding_size=embedding_size, mxu_dtype=jnp.bfloat16)

    out = multihead_forward(x, w_qkv_f, w_proj_f, b_proj_f, num_heads=num_heads)
    out = jax.block_until_ready(out)

    ref = multihead_reference(x, w_q_heads, w_k_heads, w_v_heads, w_proj, b_proj,
                              embedding_size=embedding_size)
    assert out.shape == (B, T, C), out.shape
    # Tolerance admits bf16 MXU operands + the EUP approximate reciprocal used
    # for the softmax normalization (exact-f32 path: mxu_dtype=jnp.float32,
    # approx_recip=False).
    assert jnp.allclose(out, ref, atol=3e-2, rtol=3e-2), "mismatch vs reference"

    print("KERNEL_OK")
</pallas_src>

<mosaic_0001>
module attributes {stable_mosaic.version = 11 : i64} {
  func.func @_mha_kernel(%arg0: i32, %arg1: memref<1x8x32xf32, #tpu.memory_space<vmem>>, %arg2: memref<32x96xbf16, #tpu.memory_space<vmem>>, %arg3: memref<32x32xbf16, #tpu.memory_space<vmem>>, %arg4: memref<1x32xf32, #tpu.memory_space<vmem>>, %arg5: memref<1x8x32xf32, #tpu.memory_space<vmem>>) attributes {dimension_semantics = [#tpu.dimension_semantics<parallel>], iteration_bounds = array<i64: 2>, scalar_prefetch = 0 : i64, scratch_operands = 0 : i64, tpu.core_type = #tpu.core_type<tc>, window_params = [{transform_indices = @transform_0, window_bounds = array<i64: 1, 8, 32>}, {pipeline_mode = #tpu.pipeline_mode<synchronous>, transform_indices = @transform_1, window_bounds = array<i64: 32, 96>}, {pipeline_mode = #tpu.pipeline_mode<synchronous>, transform_indices = @transform_2, window_bounds = array<i64: 32, 32>}, {pipeline_mode = #tpu.pipeline_mode<synchronous>, transform_indices = @transform_3, window_bounds = array<i64: 1, 32>}, {transform_indices = @transform_4, window_bounds = array<i64: 1, 8, 32>}]} {
    %c0 = arith.constant 0 : index
    %c0_0 = arith.constant 0 : index
    %c0_1 = arith.constant 0 : index
    %0 = vector.load %arg1[%c0, %c0_0, %c0_1] : memref<1x8x32xf32, #tpu.memory_space<vmem>>, vector<1x8x32xf32>
    %1 = vector.shape_cast %0 : vector<1x8x32xf32> to vector<8x32xf32>
    %2 = arith.truncf %1 : vector<8x32xf32> to vector<8x32xbf16>
    %c0_2 = arith.constant 0 : index
    %c0_3 = arith.constant 0 : index
    %3 = vector.load %arg2[%c0_2, %c0_3] : memref<32x96xbf16, #tpu.memory_space<vmem>>, vector<32x96xbf16>
    %cst = arith.constant dense<0.000000e+00> : vector<8x96xf32>
    %4 = tpu.matmul %2, %3, %cst {dimension_numbers = #tpu.dot_dimension_numbers<[1], [0], [0], [1], [0, 0, 1, 1], [], []>} : vector<8x32xbf16>, vector<32x96xbf16>, vector<8x96xf32> -> vector<8x96xf32>
    %5 = arith.truncf %4 : vector<8x96xf32> to vector<8x96xbf16>
    %6 = vector.shape_cast %5 : vector<8x96xbf16> to vector<1x8x96xbf16>
    %7 = vector.extract_strided_slice %6 {offsets = [0, 0, 0], sizes = [1, 8, 32], strides = [1, 1, 1]} : vector<1x8x96xbf16> to vector<1x8x32xbf16>
    %8 = vector.extract_strided_slice %6 {offsets = [0, 0, 32], sizes = [1, 8, 32], strides = [1, 1, 1]} : vector<1x8x96xbf16> to vector<1x8x32xbf16>
    %9 = vector.extract_strided_slice %6 {offsets = [0, 0, 64], sizes = [1, 8, 32], strides = [1, 1, 1]} : vector<1x8x96xbf16> to vector<1x8x32xbf16>
    %10 = tpu.iota {dimensions = array<i32: 0>} : vector<8x8xi32>
    %11 = tpu.iota {dimensions = array<i32: 1>} : vector<8x8xi32>
    %12 = arith.cmpi sle, %11, %10 : vector<8x8xi32>
    %13 = vector.shape_cast %12 : vector<8x8xi1> to vector<1x8x8xi1>
    %c0_4 = arith.constant 0 : index
    %c0_5 = arith.constant 0 : index
    %14 = vector.load %arg3[%c0_4, %c0_5] : memref<32x32xbf16, #tpu.memory_space<vmem>>, vector<32x32xbf16>
    %cst_6 = arith.constant 0.000000e+00 : f32
    %15 = vector.broadcast %cst_6 : f32 to vector<8x32xf32>
    %16 = vector.extract_strided_slice %7 {offsets = [0, 0, 0], sizes = [1, 8, 16], strides = [1, 1, 1]} : vector<1x8x32xbf16> to vector<1x8x16xbf16>
    %17 = vector.extract_strided_slice %8 {offsets = [0, 0, 0], sizes = [1, 8, 16], strides = [1, 1, 1]} : vector<1x8x32xbf16> to vector<1x8x16xbf16>
    %18 = vector.extract_strided_slice %9 {offsets = [0, 0, 0], sizes = [1, 8, 16], strides = [1, 1, 1]} : vector<1x8x32xbf16> to vector<1x8x16xbf16>
    "tpu.trace_start"() <{level = 10 : i32, message = "bqd,bkd->bqk"}> : () -> ()
    %cst_7 = arith.constant dense<0.000000e+00> : vector<1x8x8xf32>
    %19 = tpu.matmul %16, %17, %cst_7 {dimension_numbers = #tpu.dot_dimension_numbers<[2], [2], [1], [1], [0, 0, 0, 1, 1, 1], [0], [0]>} : vector<1x8x16xbf16>, vector<1x8x16xbf16>, vector<1x8x8xf32> -> vector<1x8x8xf32>
    %cst_8 = arith.constant 0xFF800000 : f32
    "tpu.trace_stop"() : () -> ()
    %20 = vector.broadcast %cst_8 : f32 to vector<1x8x8xf32>
    %21 = arith.select %13, %19, %20 : vector<1x8x8xi1>, vector<1x8x8xf32>
    %cst_9 = arith.constant dense<0xFF800000> : vector<1x8xf32>
    %22 = vector.multi_reduction <maximumf>, %21, %cst_9 [2] : vector<1x8x8xf32> to vector<1x8xf32>
    %23 = vector.shape_cast %22 : vector<1x8xf32> to vector<1x8x1xf32>
    %24 = vector.broadcast %23 : vector<1x8x1xf32> to vector<1x8x8xf32>
    %25 = arith.subf %21, %24 : vector<1x8x8xf32>
    %26 = math.exp %25 : vector<1x8x8xf32>
    %cst_10 = arith.constant dense<0.000000e+00> : vector<1x8xf32>
    %27 = vector.multi_reduction <add>, %26, %cst_10 [2] : vector<1x8x8xf32> to vector<1x8xf32>
    %28 = vector.shape_cast %27 : vector<1x8xf32> to vector<1x8x1xf32>
    %29 = arith.truncf %26 : vector<1x8x8xf32> to vector<1x8x8xbf16>
    "tpu.trace_start"() <{level = 10 : i32, message = "bqk,bkd->bqd"}> : () -> ()
    %cst_11 = arith.constant dense<0.000000e+00> : vector<1x8x16xf32>
    %30 = tpu.matmul %29, %18, %cst_11 {dimension_numbers = #tpu.dot_dimension_numbers<[2], [1], [1], [2], [0, 0, 0, 1, 1, 2], [0], [0]>} : vector<1x8x8xbf16>, vector<1x8x16xbf16>, vector<1x8x16xf32> -> vector<1x8x16xf32>
    "tpu.trace_stop"() : () -> ()
    %31 = tpu.reciprocal %28 {approx = true} : vector<1x8x1xf32> -> vector<1x8x1xf32>
    %32 = vector.broadcast %31 : vector<1x8x1xf32> to vector<1x8x16xf32>
    %33 = arith.mulf %30, %32 : vector<1x8x16xf32>
    %34 = vector.shape_cast %33 : vector<1x8x16xf32> to vector<8x16xf32>
    %35 = arith.truncf %34 : vector<8x16xf32> to vector<8x16xbf16>
    %36 = vector.extract_strided_slice %14 {offsets = [0, 0], sizes = [16, 32], strides = [1, 1]} : vector<32x32xbf16> to vector<16x32xbf16>
    %cst_12 = arith.constant dense<0.000000e+00> : vector<8x32xf32>
    %37 = tpu.matmul %35, %36, %cst_12 {dimension_numbers = #tpu.dot_dimension_numbers<[1], [0], [0], [1], [0, 0, 1, 1], [], []>} : vector<8x16xbf16>, vector<16x32xbf16>, vector<8x32xf32> -> vector<8x32xf32>
    %38 = arith.addf %15, %37 : vector<8x32xf32>
    %39 = vector.extract_strided_slice %7 {offsets = [0, 0, 16], sizes = [1, 8, 16], strides = [1, 1, 1]} : vector<1x8x32xbf16> to vector<1x8x16xbf16>
    %40 = vector.extract_strided_slice %8 {offsets = [0, 0, 16], sizes = [1, 8, 16], strides = [1, 1, 1]} : vector<1x8x32xbf16> to vector<1x8x16xbf16>
    %41 = vector.extract_strided_slice %9 {offsets = [0, 0, 16], sizes = [1, 8, 16], strides = [1, 1, 1]} : vector<1x8x32xbf16> to vector<1x8x16xbf16>
    "tpu.trace_start"() <{level = 10 : i32, message = "bqd,bkd->bqk"}> : () -> ()
    %cst_13 = arith.constant dense<0.000000e+00> : vector<1x8x8xf32>
    %42 = tpu.matmul %39, %40, %cst_13 {dimension_numbers = #tpu.dot_dimension_numbers<[2], [2], [1], [1], [0, 0, 0, 1, 1, 1], [0], [0]>} : vector<1x8x16xbf16>, vector<1x8x16xbf16>, vector<1x8x8xf32> -> vector<1x8x8xf32>
    %cst_14 = arith.constant 0xFF800000 : f32
    "tpu.trace_stop"() : () -> ()
    %43 = vector.broadcast %cst_14 : f32 to vector<1x8x8xf32>
    %44 = arith.select %13, %42, %43 : vector<1x8x8xi1>, vector<1x8x8xf32>
    %cst_15 = arith.constant dense<0xFF800000> : vector<1x8xf32>
    %45 = vector.multi_reduction <maximumf>, %44, %cst_15 [2] : vector<1x8x8xf32> to vector<1x8xf32>
    %46 = vector.shape_cast %45 : vector<1x8xf32> to vector<1x8x1xf32>
    %47 = vector.broadcast %46 : vector<1x8x1xf32> to vector<1x8x8xf32>
    %48 = arith.subf %44, %47 : vector<1x8x8xf32>
    %49 = math.exp %48 : vector<1x8x8xf32>
    %cst_16 = arith.constant dense<0.000000e+00> : vector<1x8xf32>
    %50 = vector.multi_reduction <add>, %49, %cst_16 [2] : vector<1x8x8xf32> to vector<1x8xf32>
    %51 = vector.shape_cast %50 : vector<1x8xf32> to vector<1x8x1xf32>
    %52 = arith.truncf %49 : vector<1x8x8xf32> to vector<1x8x8xbf16>
    "tpu.trace_start"() <{level = 10 : i32, message = "bqk,bkd->bqd"}> : () -> ()
    %cst_17 = arith.constant dense<0.000000e+00> : vector<1x8x16xf32>
    %53 = tpu.matmul %52, %41, %cst_17 {dimension_numbers = #tpu.dot_dimension_numbers<[2], [1], [1], [2], [0, 0, 0, 1, 1, 2], [0], [0]>} : vector<1x8x8xbf16>, vector<1x8x16xbf16>, vector<1x8x16xf32> -> vector<1x8x16xf32>
    "tpu.trace_stop"() : () -> ()
    %54 = tpu.reciprocal %51 {approx = true} : vector<1x8x1xf32> -> vector<1x8x1xf32>
    %55 = vector.broadcast %54 : vector<1x8x1xf32> to vector<1x8x16xf32>
    %56 = arith.mulf %53, %55 : vector<1x8x16xf32>
    %57 = vector.shape_cast %56 : vector<1x8x16xf32> to vector<8x16xf32>
    %58 = arith.truncf %57 : vector<8x16xf32> to vector<8x16xbf16>
    %59 = vector.extract_strided_slice %14 {offsets = [16, 0], sizes = [16, 32], strides = [1, 1]} : vector<32x32xbf16> to vector<16x32xbf16>
    %cst_18 = arith.constant dense<0.000000e+00> : vector<8x32xf32>
    %60 = tpu.matmul %58, %59, %cst_18 {dimension_numbers = #tpu.dot_dimension_numbers<[1], [0], [0], [1], [0, 0, 1, 1], [], []>} : vector<8x16xbf16>, vector<16x32xbf16>, vector<8x32xf32> -> vector<8x32xf32>
    %61 = arith.addf %38, %60 : vector<8x32xf32>
    %c0_19 = arith.constant 0 : index
    %c0_20 = arith.constant 0 : index
    %62 = vector.load %arg4[%c0_19, %c0_20] : memref<1x32xf32, #tpu.memory_space<vmem>>, vector<1x32xf32>
    %63 = vector.broadcast %62 : vector<1x32xf32> to vector<8x32xf32>
    %64 = arith.addf %61, %63 : vector<8x32xf32>
    %65 = vector.shape_cast %64 : vector<8x32xf32> to vector<1x8x32xf32>
    %c0_21 = arith.constant 0 : index
    %c0_22 = arith.constant 0 : index
    %c0_23 = arith.constant 0 : index
    %66 = vector.load %arg5[%c0_21, %c0_22, %c0_23] : memref<1x8x32xf32, #tpu.memory_space<vmem>>, vector<1x8x32xf32>
    tpu.vector_store %arg5[%c0_21, %c0_22, %c0_23], %65 {strides = array<i32>} : memref<1x8x32xf32, #tpu.memory_space<vmem>>, vector<1x8x32xf32>,
    return
  }
  func.func @transform_0(%arg0: i32) -> (i32, i32, i32) {
    %c0_i32 = arith.constant 0 : i32
    %c0_i32_0 = arith.constant 0 : i32
    %c0_i32_1 = arith.constant 0 : i32
    return %arg0, %c0_i32, %c0_i32_0 : i32, i32, i32
  }
  func.func @transform_1(%arg0: i32) -> (i32, i32) {
    %c0_i32 = arith.constant 0 : i32
    %c0_i32_0 = arith.constant 0 : i32
    %c0_i32_1 = arith.constant 0 : i32
    return %c0_i32, %c0_i32_0 : i32, i32
  }
  func.func @transform_2(%arg0: i32) -> (i32, i32) {
    %c0_i32 = arith.constant 0 : i32
    %c0_i32_0 = arith.constant 0 : i32
    %c0_i32_1 = arith.constant 0 : i32
    return %c0_i32, %c0_i32_0 : i32, i32
  }
  func.func @transform_3(%arg0: i32) -> (i32, i32) {
    %c0_i32 = arith.constant 0 : i32
    %c0_i32_0 = arith.constant 0 : i32
    %c0_i32_1 = arith.constant 0 : i32
    return %c0_i32, %c0_i32_0 : i32, i32
  }
  func.func @transform_4(%arg0: i32) -> (i32, i32, i32) {
    %c0_i32 = arith.constant 0 : i32
    %c0_i32_0 = arith.constant 0 : i32
    %c0_i32_1 = arith.constant 0 : i32
    return %arg0, %c0_i32, %c0_i32_0 : i32, i32, i32
  }
}

</mosaic_0001>

<bundles_post_ra>
// kernel: tpu_custom_call.1
= control target key start
LH: loop header
LB: loop body
LE: loop exit
PB: predicated region body
PF: predicated region fallthrough
CT: control target
= control target key end

     0   :  { %9 = vsyncpa [#allocation3], 0  ;;  %s1057_s0 = inlined_call_operand.hbm [shape: f32[2,8,32], index: 0, kind: input, shape index: {}]   ;;  %s1058_s1 = inlined_call_operand.hbm [shape: bf16[32,96], index: 1, kind: input, shape index: {}]   ;;  %s1059_s2 = inlined_call_operand.hbm [shape: bf16[32,32], index: 2, kind: input, shape index: {}]   ;;  %s1060_s3 = inlined_call_operand.vmem [shape: f32[1,32], index: 3, kind: input, shape index: {}]   ;;  %s1061_s4 = inlined_call_operand.hbm [shape: f32[2,8,32], index: 4, kind: output, shape index: {}]  }
   0x1   :  { %11 = vsyncpa [#allocation3 + $0x1], 0 }
   0x2   :  { %12 = vsyncpa [#allocation6], 0 }
   0x3   :  { %13 = vsyncpa [#allocation4], 0 }
   0x4   :  { %15 = vsyncpa [#allocation4 + $0x1], 0  ;;  %s891_s15 = smov 0   ;;  %s893_s16 = smov 0  }
   0x5   :  { %s895_s17 = smov 0   ;;  %s897_s18 = smov 0  }
   0x6 LB: > { %s152_s21 = sshll.u32 %s1058_s1, 4  ;;  %s915_s22 = sadd.s32 4294967295, %s855_s18   ;;  %s855_s18 = sphi %s897_s18, %s1072_s18   ;;  %s851_s17 = sphi %s895_s17, %s1071_s17   ;;  %s847_s16 = sphi %s893_s16, %s1070_s16   ;;  %s843_s15 = sphi %s891_s15, %s1069_s15   ;;  %s153_s21 = int_to_ptr.hbm [resolvable:$true] %s152_s21 }
   0x7   : > { %p570_p0 = scmp.ge.s32.totalorder %s855_s18, 1  ;;  %p42_p1 = scmp.eq.s32.totalorder %s915_s22, 0 }
   0x8   : > { %p141_p2 = scmp.lt.s32.totalorder %s855_s18, 3  ;;  %s857_s24 = smov [#allocation5]  }
   0x9   : > { %s154_s25 = sshll.u32 %s857_s24, 4  ;;  %s166_s28 = sshll.u32 %s1059_s2, 4  ;;  %s155_s25 = int_to_ptr.vmem [resolvable:$true] %s154_s25  ;;  %s167_s28 = int_to_ptr.hbm [resolvable:$true] %s166_s28 }
   0xa   : > { %p920_p3 = pnand %p570_p0, %p141_p2  ;;  %s858_s29 = smov [#allocation7]  }
   0xb   : > { %s168_s30 = sshll.u32 %s858_s29, 4  ;;  %s859_s5 = smov 64   ;;  %s169_s30 = int_to_ptr.vmem [resolvable:$true] %s168_s30 }
   0xc   : > { %p624_p4 = pneg %p920_p3  ;;  %s860_s6 = smov 4  }
   0xd   : > { %s569_s7 = sadd.s32 4294967294, %s855_s18   ;;  %s934_s8 = sadd.s32 1, %s855_s18  }
   0xe   : > { %p625_p6 = pnand %p624_p4, %p42_p1  ;;  %s25_s9 = ssub.s32 %s855_s18, %s934_s8 }
   0xf   : > { %s28_s10 = sadd.s32 1, %s851_s17  ;;  %p26_p7 = scmp.eq.s32.totalorder %s25_s9, 0 }
  0x10   : > { %627 = dma.hbm_to_vmem [thread:$0]  (!%p625_p6), %s153_s21, 256, %s155_s25, [#allocation6], %s859_s5, %s859_s5, %s860_s6  }
  0x11   : > { %630 = dma.hbm_to_vmem [thread:$0]  (!%p625_p6), %s167_s28, 256, %s169_s30, [#allocation6], %s859_s5, %s859_s5, %s860_s6  }
  0x12   : > { %p35_p8 = scmp.ne.s32.totalorder %s851_s17, %s847_s16  ;;  %p36_p9 = scmp.eq.s32.totalorder %s855_s18, 0 }
  0x13   : > { %p41_p10 = scmp.ne.s32.totalorder %s847_s16, %s843_s15  ;;  %p128_p13 = scmp.eq.s32.totalorder %s915_s22, 1 }
  0x14   : > { %s945_s11 = scalar_select %p26_p7, %s851_s17, %s28_s10  }
  0x15   : > { %p947_p11 = por %p36_p9, %p35_p8  ;;  %p953_p12 = por %p42_p1, %p41_p10 }
  0x16   : > { %p134_p0 = scmp.eq.s32.totalorder %s569_s7, 1  ;;  %p641_p2 = scmp.lt.s32.totalorder %s855_s18, 2 }
  0x17   : > { %s185_s14 = sand.u32 1, %s851_s17   ;;  %p960_p4 = por %p128_p13, %p35_p8 }
  0x18   : > { %p964_p6 = por %p134_p0, %p41_p10  ;;  %s574_s21 = sshll.u32 %s185_s14, 3 }
  0x19   : > { %s575_s24 = sshll.u32 %s855_s18, 3  ;;  %s189_s28 = scalar_lea.vmem [#allocation2], %s574_s21 }
  0x1a   : > { %s193_s27 = scalar_lea.hbm %s1057_s0, %s575_s24  ;;  %s197_s29 = sshll.u32 %s189_s28, 4  ;;  %s198_s29 = int_to_ptr.vmem [resolvable:$true] %s197_s29 }
  0x1b   : > { %s195_s30 = sshll.u32 %s193_s27, 4  ;;  %p974_p7 = pnand %p641_p2, %p947_p11  ;;  %s196_s30 = int_to_ptr.hbm [resolvable:$true] %s195_s30 }
  0x1c   : > { %s186_s6 = scalar_lea.sflag [#allocation3], %s185_s14  ;;  %s755_s7 = sshra.s32 %s196_s30, 4  ;;  %s756_s7 = int_to_ptr.hbm [resolvable:$true] %s755_s7 }
  0x1d   : > { %s757_s9 = scalar_lea.hbm %s756_s7, 8  ;;  %p759_p9 = pneg %p974_p7 }
  0x1e   : > { %p758_p8 = scmp.ne.s32.totalorder %s756_s7, %s757_s9  ;;  %s762_s24 = scalar_lea.hbm %s1057_s0, 16 }
  0x1f   : > { %p763_p11 = scmp.lt.s32.totalorder %s756_s7, %s1057_s0  ;;  %p764_p0 = scmp.lt.s32.totalorder %s762_s24, %s757_s9 }
  0x20   : > { %p760_p10 = pnand %p759_p9, %p758_p8 }
  0x21   : > { %p765_p2 = por %p764_p0, %p763_p11 }
  0x22   : > { %p761_p13 = pneg %p760_p10 }
  0x24   : > { %p766_p5 = pnand %p765_p2, %p761_p13 }
  0x26   : > { %769 = shalt.err (!%p766_p5)
}
  0x27   : > { %634 = dma.hbm_to_vmem [thread:$0]  (!%p974_p7), %s196_s30, 128, %s198_s29, %s186_s6  }
  0x28   : > { %206 = sbr.rel (%p920_p3) target bundleno = 855 (0x357), region = 36  ;;  %s991_s14 = sand.u32 (!%p920_p3), 1, %s847_s16  }
  0x29   : > { %s577_s26 = sshll.u32 (!%p920_p3), %s991_s14, 3  ;;  %s209_s27 = scalar_lea.sflag (!%p920_p3), [#allocation3], %s991_s14 }
  0x2a   : > { %s212_s28 = scalar_lea.vmem (!%p920_p3), [#allocation2], %s577_s26 }
  0x2d   : > { %830 = dma.done.wait (%p953_p12), %s209_s27, 128  }
  0x2e   : > { %832 = vsyncadd (%p953_p12), %s209_s27, 4294967168 }
  0x2f   : > { %834 = dma.done.wait (%p42_p1), [#allocation6], 512  }
  0x30   : > { %836 = vsyncadd (%p42_p1), [#allocation6], 4294966784  ;;  %v609_v0 = vld [vmem:[#allocation5 + $0x8] sm:$0xff]  ;;  %v608_v1 = vld [vmem:[#allocation5] sm:$0xff]  ;;  %vm267_vm0 = vcmask 261120   ;;  %s861_s23 = smov 64   ;;  %v285_v18 = vlaneseq }
  0x31   : > { %277 = vmatpush.bf16.msra.mxu0 %v609_v0  ;;  %v249_v2 = vld [vmem:[%s212_s28] sm:$0xff]  ;;  %s862_s13 = smov 112   ;;  %s863_s29 = smov 96   ;;  %vm336_vm1 = vcmask 1043456   ;;  %vm299_vm2 = vcmask 130048   ;;  %vm320_vm4 = vcmask 64512  }
  0x32   : > { %v250_v3 = vpack.c.bf16 %v249_v2, %v249_v2  ;;  %s864_s30 = smov 80   ;;  %s865_s5 = smov 48   ;;  %v286_v19 = vshrl.u32 %v285_v18, 7  ;;  %v288_v20 = vand.u32 127, %v285_v18  ;;  %v610_v41 = vld [vmem:[#allocation7] sm:$0xff]  ;;  %v611_v42 = vld [vmem:[#allocation7 + $0x8] sm:$0xff] }
  0x33   : > { %s605_s6 = sshll.u32 %s915_s22, 3  ;;  %v686_v57 = vld [vmem:[%s1060_s3] ss:$0 sm:$0xff]  ;;  %s247_s25 = scalar_lea.vmem [#allocation8], %s577_s26 }
  0x34   : > { %vm289_vm3 = vcmp.le.s32.totalorder %v288_v20, %v286_v19  ;;  %s475_s10 = scalar_lea.hbm %s1061_s4, %s605_s6  ;;  %s477_s12 = sshll.u32 %s247_s25, 4  ;;  %s478_s12 = int_to_ptr.vmem [resolvable:$true] %s477_s12 }
  0x35   : > { %278 = vmatpush.bf16.msra.mxu0 %v608_v1  ;;  %s479_s27 = sshll.u32 %s475_s10, 4  ;;  %s465_s22 = scalar_lea.sflag [#allocation4], %s991_s14  ;;  %s480_s27 = int_to_ptr.hbm [resolvable:$true] %s479_s27 }
  0x36   : > { %s799_s28 = sshra.s32 %s480_s27, 4  ;;  %s805_s26 = scalar_lea.hbm %s1061_s4, 16  ;;  %s800_s28 = int_to_ptr.hbm [resolvable:$true] %s799_s28 }
  0x37   : > { %p806_p12 = scmp.lt.s32.totalorder %s800_s28, %s1061_s4 }
  0x38   : > { %589 = vmatmul.msk.bf16.vlgmr.msra.gmra.mxu0 %vm267_vm0, %v250_v3 }
  0x39   : > { %430 = vmatpush.bf16.msrb.mxu0 %v611_v42 }
  0xb5   : > { %v280_v4 = vpop.f32.mrf.mxu0 }
  0xb6   : > { %v284_v5 = vpack.c.bf16 %v280_v4, %v280_v4 }
  0xb8   : > { %v295_v6 = vunpack.c.l.b16 %v284_v5 }
  0xba   : > { %v296_v7 = vpack.c.b16 %v295_v6, %v295_v6 }
  0xbc   : > { %331 = vrot.lane.b32.xlu2 %v296_v7, %s861_s23  ;;  %356 = vrot.lane.b32.xlu1 %v296_v7, %s862_s13  ;;  %s801_s23 = scalar_lea.hbm %s800_s28, 8 }
  0xbd   : > { %297 = vrot.lane.b32.xlu0 %v296_v7, %s863_s29  ;;  %v282_v8 = vpop.f32.mrf.mxu0  ;;  %p802_p1 = scmp.ne.s32.totalorder %s800_s28, %s801_s23  ;;  %p807_p7 = scmp.lt.s32.totalorder %s805_s26, %s801_s23 }
  0xbf   : > { %p803_p3 = pnand %p802_p1, %p960_p4  ;;  %p808_p8 = por %p807_p7, %p806_p12 }
  0xc1   : > { %p804_p5 = pneg %p803_p3 }
  0xc3   : > { %p809_p9 = pnand %p808_p8, %p804_p5 }
  0xc5   : > { %358 = vrot.lane.b32.xlu0 %v296_v7, %s864_s30 }
  0xcd   : > { %390 = vrot.lane.b32.xlu0 %v296_v7, %s865_s5 }
 0x116   : > { %v332_v9 = vpop.permute.xlu2 %331 }
 0x117   : > { %v338_v10 = vsel %vm336_vm1, %v332_v9, 0 }
 0x118   : > { %347 = vmatpush.bf16.msra.mxu2 %v338_v10 }
 0x12e   : > { %v357_v15 = vpop.permute.xlu1 %356 }
 0x12f   : > { %v298_v11 = vpop.permute.xlu0 %297 }
 0x130   : > { %v304_v12 = vsel %vm299_vm2, %v298_v11, 0 }
 0x131   : > { %313 = vmatpush.bf16.xpose.msra.mxu1 %v304_v12 }
 0x137   : > { %v359_v13 = vpop.permute.xlu0 %358 }
 0x138   : > { %590 = vmatmul.msk.bf16.vlgmr.msra.gmra.mxu1 %vm299_vm2, %v284_v5  ;;  %v364_v14 = vsel %vm299_vm2, %v359_v13, 0 }
 0x139   : > { %373 = vmatpush.bf16.xpose.msra.mxu3 %v364_v14  ;;  %452 = vmatpush.bf16.msrb.mxu1 %v610_v41 }
 0x13f   : > { %v391_v16 = vpop.permute.xlu0 %390 }
 0x140   : > { %592 = vmatmul.msk.bf16.vlgmr.msra.gmra.mxu3 %vm299_vm2, %v357_v15  ;;  %v396_v17 = vsel %vm336_vm1, %v391_v16, 0 }
 0x141   : > { %405 = vmatpush.bf16.msrb.mxu2 %v396_v17 }
 0x1b5   : > { %v315_v21 = vpop.f32.mrf.mxu1 }
 0x1b6   : > { %v319_v22 = vsel %vm289_vm3, %v315_v21, -inf }
 0x1b7   : > { %v321_v23 = vsel %vm320_vm4, %v319_v22, -inf }
 0x1b8   : > { %322 = vmax.xlane.f32.xlu1 %v321_v23 }
 0x1bd   : > { %v317_v24 = vpop.f32.mrf.mxu1 }
 0x1c3   : > { %v375_v25 = vpop.f32.mrf.mxu3 }
 0x1c4   : > { %v379_v26 = vsel %vm289_vm3, %v375_v25, -inf }
 0x1c5   : > { %v380_v27 = vsel %vm320_vm4, %v379_v26, -inf }
 0x1c6   : > { %381 = vmax.xlane.f32.xlu2 %v380_v27 }
 0x1cb   : > { %v377_v28 = vpop.f32.mrf.mxu3 }
 0x22b   : > { %v323_v29 = vpop.xlane.xlu1 %322 }
 0x22c   : > { %v324_v30 = vsub.f32 %v319_v22, %v323_v29 }
 0x22e   : > { %v325_v31 = vmul.f32 1.442695, %v324_v30 }
 0x230   : > { %687 = vpow2.f32 %v325_v31 }
 0x236   : > { %v688_v32 = vpop.eup %687 }
 0x237   : > { %v327_v33 = vsel %vm320_vm4, %v688_v32, 0.0  ;;  %v330_v34 = vpack.c.bf16 %v688_v32, %v688_v32 }
 0x238   : > { %328 = vadd.xlane.f32.xlu0 %v327_v33 }
 0x239   : > { %591 = vmatmul.msk.bf16.vlgmr.msra.gmra.mxu2 %vm320_vm4, %v330_v34  ;;  %v382_v35 = vpop.xlane.xlu2 %381 }
 0x23a   : > { %v383_v36 = vsub.f32 %v379_v26, %v382_v35 }
 0x23c   : > { %v384_v37 = vmul.f32 1.442695, %v383_v36 }
 0x23e   : > { %689 = vpow2.f32 %v384_v37 }
 0x244   : > { %v690_v38 = vpop.eup %689 }
 0x245   : > { %v386_v39 = vsel %vm320_vm4, %v690_v38, 0.0  ;;  %v389_v40 = vpack.c.bf16 %v690_v38, %v690_v38 }
 0x246   : > { %387 = vadd.xlane.f32.xlu2 %v386_v39 }
 0x249   : > { %593 = vmatmul.msk.bf16.vlgmr.msrb.gmra.mxu2 %vm320_vm4, %v389_v40 }
 0x2ab   : > { %v329_v43 = vpop.xlane.xlu0 %328 }
 0x2ac   : > { %691 = vrcp.f32 %v329_v43 }
 0x2b2   : > { %v692_v44 = vpop.eup %691 }
 0x2b9   : > { %v388_v48 = vpop.xlane.xlu2 %387 }
 0x2ba   : > { %693 = vrcp.f32 %v388_v48 }
 0x2bc   : > { %v349_v45 = vpop.f32.mrf.mxu2 }
 0x2bd   : > { %v354_v46 = vmul.f32 %v692_v44, %v349_v45 }
 0x2bf   : > { %v355_v47 = vpack.c.bf16 %v354_v46, %v354_v46 }
 0x2c0   : > { %v694_v50 = vpop.eup %693 }
 0x2c1   : > { %603 = vmatmul.msk.bf16.vlgmr.msrb.gmra.mxu1 %vm299_vm2, %v355_v47 }
 0x2c4   : > { %v351_v49 = vpop.f32.mrf.mxu2 }
 0x2cc   : > { %v407_v51 = vpop.f32.mrf.mxu2 }
 0x2cd   : > { %v412_v52 = vmul.f32 %v694_v50, %v407_v51 }
 0x2cf   : > { %v413_v53 = vpack.c.bf16 %v412_v52, %v412_v52 }
 0x2d1   : > { %598 = vmatmul.msk.bf16.vlgmr.msrb.gmra.mxu0 %vm299_vm2, %v413_v53 }
 0x2d4   : > { %v409_v54 = vpop.f32.mrf.mxu2 }
 0x33e   : > { %v454_v55 = vpop.f32.mrf.mxu1 }
 0x346   : > { %v456_v56 = vpop.f32.mrf.mxu1 }
 0x34e   : > { %v432_v58 = vpop.f32.mrf.mxu0 }
 0x34f   : > { %v455_v59 = vadd.f32 %v454_v55, %v432_v58 }
 0x351   : > { %v462_v60 = vadd.f32 %v686_v57, %v455_v59 }
 0x353   : > { %463 = vst.msk [vmem:[%s247_s25] sm:$0xff] %vm267_vm0, %v462_v60 }
 0x354   : > { %812 = shalt.err (!%p809_p9)
}
 0x355   : > { %622 = dma.vmem_to_hbm [thread:$0]  (%p960_p4), %s478_s12, 128, %s480_s27, %s465_s22  }
 0x356   : > { %v434_v61 = vpop.f32.mrf.mxu0 }
 0x357 PF: > { %s491_s14 = sand.u32 1, %s843_s15   ;;  %p1068_p10 = scmp.ge.s32.totalorder %s855_s18, 2 }
 0x358   : > { %s492_s6 = scalar_lea.sflag [#allocation4], %s491_s14 }
 0x359   : > { %p636_p13 = pnand %p1068_p10, %p964_p6 }
 0x35b   : > { %p637_p11 = pneg %p636_p13 }
 0x35d   : > { %838 = dma.done.wait (%p637_p11), %s492_s6, 128  }
 0x35e   : > { %840 = vsyncadd (%p637_p11), %s492_s6, 4294967168  ;;  %p18_p0 = scmp.ge.s32.totalorder %s934_s8, 4   ;;  %s1069_s15 = smov %s847_s16 }
 0x35f   : > { %s1070_s16 = smov %s851_s17  ;;  %s1071_s17 = smov %s945_s11 }
 0x360   : > { %s1072_s18 = smov %s934_s8  ;;  %20 = sbr.rel (!%p18_p0) target bundleno = 6 (0x6), region = 89 }
 0x365   :  { %498 = vsyncpa [#allocation3], 1 }
 0x366   :  { %500 = vsyncpa [#allocation3 + $0x1], 1 }
 0x367   :  { %501 = vsyncpa [#allocation6], 1 }
 0x368   :  { %502 = vsyncpa [#allocation4], 1 }
 0x369   :  { %504 = vsyncpa [#allocation4 + $0x1], 1 }

</bundles_post_ra>
